<compile_context>
chip_gen: v6e
topology: v6e:2x2x1
jax: 0.10.0
libtpu: 0.0.40
codegen_flags: <defaults>
</compile_context>

<pallas_src>
import functools
import math

import jax
import jax.numpy as jnp
from jax.experimental import pallas as pl
from jax.experimental.pallas import tpu as pltpu


def _round_up(x, m):
    return ((x + m - 1) // m) * m


def _cosface_kernel(x_ref, w_ref, winv_ref, lab_ref, out_ref, xn_ref, *,
                    s, m, eps, mxu_dtype):
    j = pl.program_id(1)

    # Normalize the batch tile once per batch tile (class axis is the inner
    # grid axis) and cache it in VMEM scratch in the MXU input dtype.
    @pl.when(j == 0)
    def _():
        x = x_ref[...].astype(jnp.float32)                       # (tb, D)
        ssq = jnp.sum(x * x, axis=-1, keepdims=True)
        # F.normalize: x / max(||x||, eps) == x * min(rsqrt(ssq), 1/eps)
        inv = jnp.minimum(jax.lax.rsqrt(ssq), 1.0 / eps)
        xn_ref[...] = (x * inv).astype(xn_ref.dtype)

    # Weight tile normalization: the row-norm reductions were hoisted to the
    # wrapper (batch-independent); in-kernel it is just a scale + cast.
    wn = (w_ref[...].astype(jnp.float32) * winv_ref[...]).astype(mxu_dtype)

    # cosine = xn @ wn.T : contract the feature axis of both (MXU, f32 acc).
    cosine = jax.lax.dot_general(
        xn_ref[...], wn,
        dimension_numbers=(((1,), (1,)), ((), ())),
        preferred_element_type=jnp.float32,
    )                                                            # (tb, tc)

    tb, tc = cosine.shape
    class_ids = jax.lax.broadcasted_iota(jnp.int32, (tb, tc), 1) + j * tc
    labels = lab_ref[...]                                        # (tb, 1) int32
    out = jnp.where(class_ids == labels, cosine - m, cosine)
    out_ref[...] = (s * out).astype(out_ref.dtype)


def cosface_forward(x, weight, label, *, s=30.0, m=0.3, eps=1e-12,
                    tb=128, tc=512, mxu_dtype=jnp.bfloat16):
    """Pallas CosFace forward.

    Args:
      x:      (batch, in_features) float array.
      weight: (out_features, in_features) float array (PyTorch layout).
      label:  (batch,) integer class ids.
      tb/tc:  batch / class tile sizes (rounded to multiples of 8 / 128).
      mxu_dtype: dtype fed to the MXU (bf16 on v6e/v7x, f32 for exact match).
    Returns:
      (batch, out_features) float32 logits matching the PyTorch forward.
    """
    B, D = x.shape
    C, D2 = weight.shape
    assert D == D2

    # Tile sizes: sublane-multiple batch tile, lane-dense class tile.
    tb = _round_up(min(tb, _round_up(B, 8)), 8)
    tc = _round_up(min(tc, _round_up(C, 128)), 128)
    Bp = _round_up(B, tb)
    Cp = _round_up(C, tc)

    # Pad to tile multiples. Zero rows normalize to zero, label -1 never
    # matches a class id, and padded classes are sliced off at the end.
    if Bp != B:
        x = jnp.pad(x, ((0, Bp - B), (0, 0)))
    if Cp != C:
        weight = jnp.pad(weight, ((0, Cp - C), (0, 0)))
    lab = label.astype(jnp.int32)
    if Bp != B:
        lab = jnp.pad(lab, (0, Bp - B), constant_values=-1)
    lab2d = lab.reshape(Bp, 1)

    # Precompute weight row inverse-norms once (batch-independent O(C*D)).
    w32 = weight.astype(jnp.float32)
    w_ssq = jnp.sum(w32 * w32, axis=1, keepdims=True)
    w_inv = jnp.minimum(jax.lax.rsqrt(w_ssq), 1.0 / eps)          # (Cp, 1) f32

    kernel = functools.partial(
        _cosface_kernel, s=float(s), m=float(m), eps=float(eps),
        mxu_dtype=mxu_dtype)

    grid = (Bp // tb, Cp // tc)

    # VMEM budget (double-buffered inputs/outputs + xn scratch); clamp so the
    # scoped limit stays valid on v7x (64 MiB physical VMEM).
    xb = jnp.dtype(x.dtype).itemsize
    wb = jnp.dtype(weight.dtype).itemsize
    mb = jnp.dtype(mxu_dtype).itemsize
    vmem_est = (2 * (tb * D * xb + tc * D * wb + tc * 4 + tb * 4 + tb * tc * 4)
                + tb * D * mb)
    vmem_limit = int(min(64 * 1024 * 1024,
                         max(32 * 1024 * 1024, 2 * vmem_est)))

    out = pl.pallas_call(
        kernel,
        out_shape=jax.ShapeDtypeStruct((Bp, Cp), jnp.float32),
        grid_spec=pltpu.PrefetchScalarGridSpec(
            num_scalar_prefetch=0,
            grid=grid,
            in_specs=[
                pl.BlockSpec((tb, D), lambda i, j: (i, 0)),   # x tile
                pl.BlockSpec((tc, D), lambda i, j: (j, 0)),   # weight tile
                pl.BlockSpec((tc, 1), lambda i, j: (j, 0)),   # weight inv norms
                pl.BlockSpec((tb, 1), lambda i, j: (i, 0)),   # labels
            ],
            out_specs=pl.BlockSpec((tb, tc), lambda i, j: (i, j)),
            scratch_shapes=[pltpu.VMEM((tb, D), mxu_dtype)],  # cached norm. x
        ),
        compiler_params=pltpu.CompilerParams(
            # Class axis must be "arbitrary": the xn scratch written at j == 0
            # is reused by j > 0 on the same core. Batch axis is parallel so
            # v7x megacore shards batch tiles across its two TensorCores.
            dimension_semantics=("parallel", "arbitrary"),
            vmem_limit_bytes=vmem_limit,
        ),
        cost_estimate=pl.CostEstimate(
            flops=2 * Bp * Cp * D,
            transcendentals=Bp + Cp,
            bytes_accessed=(Bp * D * xb + (Bp // tb) * Cp * D * wb
                            + Bp * Cp * 4 + Cp * 4 + Bp * 4),
        ),
    )(x, weight, w_inv, lab2d)

    return out[:B, :C]


def xavier_uniform(key, out_features, in_features):
    # nn.init.xavier_uniform_: U(-a, a), a = sqrt(6 / (fan_in + fan_out))
    bound = math.sqrt(6.0 / (in_features + out_features))
    return jax.random.uniform(
        key, (out_features, in_features), dtype=jnp.float32,
        minval=-bound, maxval=bound)


if __name__ == "__main__":
    batch, in_features, out_features = 50, 128, 200
    s_scale, margin = 30.0, 0.3

    key = jax.random.PRNGKey(0)
    kx, kw, kl = jax.random.split(key, 3)
    x = jax.random.normal(kx, (batch, in_features), dtype=jnp.float32)
    weight = xavier_uniform(kw, out_features, in_features)
    label = jax.random.randint(kl, (batch,), 0, out_features, dtype=jnp.int32)

    # Pure-JAX reference (mirrors the PyTorch forward).
    xn = x / jnp.maximum(jnp.linalg.norm(x, axis=1, keepdims=True), 1e-12)
    wn = weight / jnp.maximum(jnp.linalg.norm(weight, axis=1, keepdims=True), 1e-12)
    cosine = xn @ wn.T
    one_hot = jax.nn.one_hot(label, out_features, dtype=jnp.float32)
    ref = s_scale * (one_hot * (cosine - margin) + (1.0 - one_hot) * cosine)

    # Small tiles so the test exercises a real multi-tile grid (2 x 2 here),
    # the class-tile offset, the cached-xn path and the padding path.
    out_f32 = cosface_forward(x, weight, label, s=s_scale, m=margin,
                              tb=32, tc=128, mxu_dtype=jnp.float32)
    out_f32 = jax.block_until_ready(out_f32)
    assert out_f32.shape == (batch, out_features)
    err = float(jnp.max(jnp.abs(out_f32 - ref)))
    assert err < 5e-3, f"f32 path max abs err {err}"

    # bf16 MXU inputs (v6e/v7x fast path): cosine in [-1, 1] with f32
    # accumulation, so |err| <~ s * 2^-8.
    out_bf16 = cosface_forward(x, weight, label, s=s_scale, m=margin,
                               tb=32, tc=128, mxu_dtype=jnp.bfloat16)
    out_bf16 = jax.block_until_ready(out_bf16)
    err_bf = float(jnp.max(jnp.abs(out_bf16 - ref)))
    assert err_bf < 0.3, f"bf16 path max abs err {err_bf}"

    print("KERNEL_OK")
</pallas_src>

<mosaic_0001>
module attributes {stable_mosaic.version = 11 : i64} {
  func.func @_cosface_kernel(%arg0: i32, %arg1: i32, %arg2: memref<32x128xf32, #tpu.memory_space<vmem>>, %arg3: memref<128x128xf32, #tpu.memory_space<vmem>>, %arg4: memref<128x1xf32, #tpu.memory_space<vmem>>, %arg5: memref<32x1xi32, #tpu.memory_space<vmem>>, %arg6: memref<32x128xf32, #tpu.memory_space<vmem>>, %arg7: memref<32x128xf32, #tpu.memory_space<vmem>>) attributes {dimension_semantics = [#tpu.dimension_semantics<parallel>, #tpu.dimension_semantics<arbitrary>], iteration_bounds = array<i64: 2, 2>, scalar_prefetch = 0 : i64, scratch_operands = 1 : i64, tpu.core_type = #tpu.core_type<tc>, window_params = [{transform_indices = @transform_0, window_bounds = array<i64: 32, 128>}, {transform_indices = @transform_1, window_bounds = array<i64: 128, 128>}, {transform_indices = @transform_2, window_bounds = array<i64: 128, 1>}, {transform_indices = @transform_3, window_bounds = array<i64: 32, 1>}, {transform_indices = @transform_4, window_bounds = array<i64: 32, 128>}]} {
    %c0_i32 = arith.constant 0 : i32
    %0 = arith.cmpi eq, %arg1, %c0_i32 : i32
    %1 = arith.extui %0 : i1 to i32
    %c0_i32_0 = arith.constant 0 : i32
    %2 = arith.cmpi ne, %1, %c0_i32_0 : i32
    scf.if %2 {
      %c0_12 = arith.constant 0 : index
      %c0_13 = arith.constant 0 : index
      %22 = vector.load %arg2[%c0_12, %c0_13] : memref<32x128xf32, #tpu.memory_space<vmem>>, vector<32x128xf32>
      %23 = arith.mulf %22, %22 : vector<32x128xf32>
      %cst_14 = arith.constant dense<0.000000e+00> : vector<32xf32>
      %24 = vector.multi_reduction <add>, %23, %cst_14 [1] : vector<32x128xf32> to vector<32xf32>
      %25 = vector.shape_cast %24 : vector<32xf32> to vector<32x1xf32>
      %26 = math.rsqrt %25 : vector<32x1xf32>
      %cst_15 = arith.constant 9.99999995E+11 : f32
      %27 = vector.broadcast %cst_15 : f32 to vector<32x1xf32>
      %28 = arith.minimumf %26, %27 : vector<32x1xf32>
      %29 = vector.broadcast %28 : vector<32x1xf32> to vector<32x128xf32>
      %30 = arith.mulf %22, %29 : vector<32x128xf32>
      %c0_16 = arith.constant 0 : index
      %c0_17 = arith.constant 0 : index
      %31 = vector.load %arg7[%c0_16, %c0_17] : memref<32x128xf32, #tpu.memory_space<vmem>>, vector<32x128xf32>
      tpu.vector_store %arg7[%c0_16, %c0_17], %30 {strides = array<i32>} : memref<32x128xf32, #tpu.memory_space<vmem>>, vector<32x128xf32>,
    } else {
    }
    %c0 = arith.constant 0 : index
    %c0_1 = arith.constant 0 : index
    %3 = vector.load %arg3[%c0, %c0_1] : memref<128x128xf32, #tpu.memory_space<vmem>>, vector<128x128xf32>
    %c0_2 = arith.constant 0 : index
    %c0_3 = arith.constant 0 : index
    %4 = vector.load %arg4[%c0_2, %c0_3] : memref<128x1xf32, #tpu.memory_space<vmem>>, vector<128x1xf32>
    %5 = vector.broadcast %4 : vector<128x1xf32> to vector<128x128xf32>
    %6 = arith.mulf %3, %5 : vector<128x128xf32>
    %c0_4 = arith.constant 0 : index
    %c0_5 = arith.constant 0 : index
    %7 = vector.load %arg7[%c0_4, %c0_5] : memref<32x128xf32, #tpu.memory_space<vmem>>, vector<32x128xf32>
    %cst = arith.constant dense<0.000000e+00> : vector<32x128xf32>
    %8 = tpu.matmul %7, %6, %cst {dimension_numbers = #tpu.dot_dimension_numbers<[1], [1], [0], [0], [0, 0, 1, 0], [], []>} : vector<32x128xf32>, vector<128x128xf32>, vector<32x128xf32> -> vector<32x128xf32>
    %9 = tpu.iota {dimensions = array<i32: 1>} : vector<32x128xi32>
    %c128_i32 = arith.constant 128 : i32
    %10 = arith.muli %arg1, %c128_i32 : i32
    %11 = vector.broadcast %10 : i32 to vector<32x128xi32>
    %12 = arith.addi %9, %11 : vector<32x128xi32>
    %c0_6 = arith.constant 0 : index
    %c0_7 = arith.constant 0 : index
    %13 = vector.load %arg5[%c0_6, %c0_7] : memref<32x1xi32, #tpu.memory_space<vmem>>, vector<32x1xi32>
    %14 = vector.broadcast %13 : vector<32x1xi32> to vector<32x128xi32>
    %15 = arith.cmpi eq, %12, %14 : vector<32x128xi32>
    %cst_8 = arith.constant 3.000000e-01 : f32
    %16 = vector.broadcast %cst_8 : f32 to vector<32x128xf32>
    %17 = arith.subf %8, %16 : vector<32x128xf32>
    %18 = arith.select %15, %17, %8 : vector<32x128xi1>, vector<32x128xf32>
    %cst_9 = arith.constant 3.000000e+01 : f32
    %19 = vector.broadcast %cst_9 : f32 to vector<32x128xf32>
    %20 = arith.mulf %19, %18 : vector<32x128xf32>
    %c0_10 = arith.constant 0 : index
    %c0_11 = arith.constant 0 : index
    %21 = vector.load %arg6[%c0_10, %c0_11] : memref<32x128xf32, #tpu.memory_space<vmem>>, vector<32x128xf32>
    tpu.vector_store %arg6[%c0_10, %c0_11], %20 {strides = array<i32>} : memref<32x128xf32, #tpu.memory_space<vmem>>, vector<32x128xf32>,
    return
  }
  func.func @transform_0(%arg0: i32, %arg1: i32) -> (i32, i32) {
    %c0_i32 = arith.constant 0 : i32
    %c0_i32_0 = arith.constant 0 : i32
    return %arg0, %c0_i32 : i32, i32
  }
  func.func @transform_1(%arg0: i32, %arg1: i32) -> (i32, i32) {
    %c0_i32 = arith.constant 0 : i32
    %c0_i32_0 = arith.constant 0 : i32
    return %arg1, %c0_i32 : i32, i32
  }
  func.func @transform_2(%arg0: i32, %arg1: i32) -> (i32, i32) {
    %c0_i32 = arith.constant 0 : i32
    %c0_i32_0 = arith.constant 0 : i32
    return %arg1, %c0_i32 : i32, i32
  }
  func.func @transform_3(%arg0: i32, %arg1: i32) -> (i32, i32) {
    %c0_i32 = arith.constant 0 : i32
    %c0_i32_0 = arith.constant 0 : i32
    return %arg0, %c0_i32 : i32, i32
  }
  func.func @transform_4(%arg0: i32, %arg1: i32) -> (i32, i32) {
    %c0_i32 = arith.constant 0 : i32
    return %arg0, %arg1 : i32, i32
  }
}

</mosaic_0001>

<bundles_post_ra>
// kernel: tpu_custom_call.1
= control target key start
LH: loop header
LB: loop body
LE: loop exit
PB: predicated region body
PF: predicated region fallthrough
CT: control target
= control target key end

     0   :  { %9 = vsyncpa [#allocation4], 0  ;;  %s1227_s0 = inlined_call_operand.vmem [shape: f32[64,128], index: 0, kind: input, shape index: {}]   ;;  %s1228_s1 = inlined_call_operand.vmem [shape: f32[256,128], index: 1, kind: input, shape index: {}]   ;;  %s1229_s2 = inlined_call_operand.vmem [shape: f32[256,1], index: 2, kind: input, shape index: {}]   ;;  %s1230_s3 = inlined_call_operand.vmem [shape: s32[64,1], index: 3, kind: input, shape index: {}]   ;;  %s1231_s4 = inlined_call_operand.hbm [shape: f32[64,256], index: 4, kind: output, shape index: {}]  }
   0x1   :  { %11 = vsyncpa [#allocation4 + $0x1], 0  ;;  %s1026_s15 = smov 0   ;;  %s1028_s16 = smov 0  }
   0x2   :  { %s1030_s17 = smov 0   ;;  %s1032_s18 = smov 0  }
   0x3   :  { %s1034_s19 = smov 0   ;;  %s1036_s20 = smov 0  }
   0x4   :  { %s1038_s21 = smov 0   ;;  %s1040_s22 = smov 0  }
   0x5 LB: > { %1237 = sst [smem:[#allocation6_spill]] %s986_s20  ;;  %s700_s23 = sadd.s32 4294967295, %s994_s22   ;;  %s994_s22 = sphi %s1040_s22, %s17_s22   ;;  %s990_s21 = sphi %s1038_s21, %s1247_s21   ;;  %s986_s20 = sphi %s1036_s20, %s1246_s20   ;;  %s982_s19 = sphi %s1034_s19, %s1245_s19   ;;  %s978_s18 = sphi %s1032_s18, %s1244_s18   ;;  %s974_s17 = sphi %s1030_s17, %s1250_s17   ;;  %s970_s16 = sphi %s1028_s16, %s1249_s16   ;;  %s966_s15 = sphi %s1026_s15, %s1248_s15  }
   0x6   : > { %1238 = sst [smem:[#allocation7_spill]] %s990_s21  ;;  %s701_s24 = sadd.s32 4294967294, %s994_s22  }
   0x7   : > { %s26_s25 = sadd.s32 1, %s986_s20  ;;  %s29_s26 = sadd.s32 1, %s990_s21 }
   0x8   : > { %p27_p0 = scmp.ge.s32.totalorder %s26_s25, 2  ;;  %p152_p1 = scmp.ne.s32.totalorder %s974_s17, %s970_s16 }
   0x9   : > { %p153_p2 = scmp.eq.s32.totalorder %s700_s23, 3  ;;  %p158_p5 = scmp.ne.s32.totalorder %s970_s16, %s966_s15 }
   0xa   : > { %s1252_s25 = smov (%p27_p0, %s26_s25), 0  ;;  %s1254_s26 = smov (!%p27_p0, %s29_s26), %s990_s21 }
   0xb   : > { %1239 = sst [smem:[#allocation8_spill]] %s1252_s25  ;;  %s138_s27 = ssub.s32 %s986_s20, %s1252_s25 }
   0xc   : > { %p1077_p3 = por %p153_p2, %p152_p1  ;;  %p31_p4 = scmp.ge.s32.totalorder %s1254_s26, 2 }
   0xd   : > { %p159_p6 = scmp.eq.s32.totalorder %s701_s24, 3  ;;  %p704_p7 = scmp.ge.s32.totalorder %s994_s22, 1 }
   0xe   : > { %s1256_s26 = smov (%p31_p4, %s1254_s26), 0  ;;  %p213_p9 = scmp.lt.s32.totalorder %s994_s22, 5 }
   0xf   : > { %1241 = sst [smem:[#allocation9_spill]] %s1256_s26  ;;  %p1086_p8 = por %p159_p6, %p158_p5 }
  0x10   : > { %s137_s30 = ssub.s32 %s990_s21, %s1256_s26  ;;  %s142_s5 = sadd.s32 1, %s974_s17 }
  0x11   : > { %s139_s6 = sor.u32 %s138_s27, %s137_s30  ;;  %p214_p10 = pnand %p704_p7, %p213_p9 }
  0x12   : > { %p140_p11 = scmp.eq.s32.totalorder %s139_s6, 0  ;;  %s1233_s8 = sand.u32 (!%p214_p10), 1, %s970_s16  }
  0x13   : > { %217 = sbr.rel (%p214_p10) target bundleno = 604 (0x25c), region = 36  ;;  %s706_s9 = sshll.u32 (!%p214_p10), %s982_s19, 2 }
  0x14   : > { %s1095_s7 = scalar_select %p140_p11, %s974_s17, %s142_s5  }
  0x15   : > { %s705_s10 = sshll.u32 (!%p214_p10), %s1233_s8, 5  ;;  %p255_p12 = scmp.lt.s32.totalorder (!%p214_p10), %s706_s9, 7 }
  0x16   : > { %s708_s11 = sshll.u32 (!%p214_p10), %s978_s18, 4  ;;  %s1120_s20 = scalar_lea.vmem (!%p214_p10), [#allocation3], %s705_s10 }
  0x17   : > { %p261_p13 = scmp.lt.s32.totalorder (!%p214_p10), %s708_s11, 31  ;;  %p714_p0 = scmp.ne.s32.totalorder (!%p214_p10), %s978_s18, 0 }
  0x18   : > { %s1258_s9 = smov (!%p255_p12, %s706_s9), 7 }
  0x19   : > { %s707_s12 = sshll.u32 %s1258_s9, 3  ;;  %s1260_s11 = smov (!%p261_p13, %s708_s11), 31 }
  0x1a   : > { %s258_s23 = scalar_lea.vmem %s1227_s0, %s707_s12  ;;  %s1108_s30 = scalar_lea.vmem %s1230_s3, %s707_s12 }
  0x1b   : > { %s709_s5 = sshll.u32 %s1260_s11, 3  ;;  %282 = sbr.rel (%p714_p0) target bundleno = 197 (0xc5), region = 40 }
  0x1c   : > { %s1113_s8 = scalar_lea.vmem %s1228_s1, %s709_s5  ;;  %s1118_s9 = scalar_lea.vmem %s1229_s2, %s709_s5 }
  0x20   : > { %v285_v0 = vld [vmem:[%s258_s23 + $0x10] sm:$0xff]  ;;  %v283_v1 = vld [vmem:[%s258_s23] sm:$0xff]  ;;  %v286_v2 = vld [vmem:[%s258_s23 + $0x18] sm:$0xff] }
  0x21   : > { %v289_v3 = vmul.f32 %v285_v0, %v285_v0  ;;  %v287_v4 = vmul.f32 %v283_v1, %v283_v1  ;;  %v284_v5 = vld [vmem:[%s258_s23 + $0x8] sm:$0xff]  ;;  %v290_v6 = vmul.f32 %v286_v2, %v286_v2 }
  0x22   : > { %v288_v7 = vmul.f32 %v284_v5, %v284_v5 }
  0x23   : > { %295 = vadd.xlane.f32.xlu1 %v289_v3  ;;  %291 = vadd.xlane.f32.xlu0 %v287_v4 }
  0x27   : > { %297 = vadd.xlane.f32.xlu1 %v290_v6  ;;  %293 = vadd.xlane.f32.xlu0 %v288_v7 }
  0xac   : > { %v296_v8 = vpop.xlane.xlu1 %295  ;;  %v292_v9 = vpop.xlane.xlu0 %291 }
  0xad   : > { %892 = vrsqrt.f32 %v296_v8 }
  0xae   : > { %894 = vrsqrt.f32 %v292_v9 }
  0xb0   : > { %v298_v10 = vpop.xlane.xlu1 %297  ;;  %v294_v11 = vpop.xlane.xlu0 %293 }
  0xb1   : > { %896 = vrsqrt.f32 %v298_v10 }
  0xb2   : > { %898 = vrsqrt.f32 %v294_v11 }
  0xba   : > { %v893_v12 = vpop.eup %892 }
  0xbb   : > { %v895_v13 = vpop.eup %894  ;;  %v305_v14 = vmin.f32 %v893_v12, 1e+12 }
  0xbc   : > { %v303_v15 = vmin.f32 %v895_v13, 1e+12 }
  0xbd   : > { %v309_v16 = vmul.f32 %v305_v14, %v285_v0 }
  0xbe   : > { %v897_v17 = vpop.eup %896  ;;  %v307_v18 = vmul.f32 %v303_v15, %v283_v1 }
  0xbf   : > { %v899_v19 = vpop.eup %898  ;;  %313 = vst [vmem:[#allocation2 + $0x18] sm:$0xff] %v309_v16  ;;  %v306_v20 = vmin.f32 %v897_v17, 1e+12 }
  0xc0   : > { %311 = vst [vmem:[#allocation2 + $0x10] sm:$0xff] %v307_v18  ;;  %v304_v21 = vmin.f32 %v899_v19, 1e+12 }
  0xc1   : > { %v310_v22 = vmul.f32 %v306_v20, %v286_v2 }
  0xc2   : > { %v308_v23 = vmul.f32 %v304_v21, %v284_v5 }
  0xc3   : > { %314 = vst [vmem:[#allocation2 + $0x8] sm:$0xff] %v310_v22 }
  0xc4   : > { %312 = vst [vmem:[#allocation2] sm:$0xff] %v308_v23 }
  0xc5 PF: > { %v346_v24 = vld [vmem:[%s1118_s9 + $0x78] sm:$0xff]  ;;  %v344_v25 = vld [vmem:[%s1118_s9 + $0x68] sm:$0xff]  ;;  %v996_v26 = vmov 0   ;;  %v345_v27 = vld [vmem:[%s1118_s9 + $0x70] sm:$0xff]  ;;  %s715_s21 = sshll.u32 %s978_s18, 7  ;;  %s726_s25 = sshll.u32 %s982_s19, 3 }
  0xc6   : > { %901 = vset.pattern.permute.xlu1 %v996_v26  ;;  %900 = vset.pattern.permute.xlu0 %v996_v26  ;;  %v343_v28 = vld [vmem:[%s1118_s9 + $0x60] sm:$0xff]  ;;  %v342_v29 = vld [vmem:[%s1118_s9 + $0x58] sm:$0xff]  ;;  %v341_v30 = vld [vmem:[%s1118_s9 + $0x50] sm:$0xff]  ;;  %s586_s26 = sadd.s32 %s978_s18, %s726_s25  ;;  %s589_s10 = sshll.u32 %s1120_s20, 4  ;;  %s1168_s10 = int_to_ptr.vmem [resolvable:$true] %s589_s10 }
  0xc7   : > { %424 = vperm.xlu0 %900, %v346_v24   ;;  %414 = vperm.xlu1 %901, %v344_v25   ;;  %v340_v31 = vld [vmem:[%s1118_s9 + $0x48] sm:$0xff]  ;;  %v339_v32 = vld [vmem:[%s1118_s9 + $0x40] sm:$0xff]  ;;  %v338_v33 = vld [vmem:[%s1118_s9 + $0x38] sm:$0xff]  ;;  %s1243_s12 = sand.u32 1, %s970_s16   ;;  %s902_s14 = scalar_lea.vmem %s1168_s10, 512 }
  0xc8   : > { %v337_v34 = vld [vmem:[%s1118_s9 + $0x30] sm:$0xff]  ;;  %v336_v35 = vld [vmem:[%s1118_s9 + $0x28] sm:$0xff]  ;;  %v335_v36 = vld [vmem:[%s1118_s9 + $0x20] sm:$0xff]  ;;  %s1176_s13 = scalar_lea.sflag [#allocation4], %s1243_s12  ;;  %p903_p1 = scmp.ne.s32.totalorder %s1168_s10, %s902_s14 }
  0xc9   : > { %v334_v37 = vld [vmem:[%s1118_s9 + $0x18] sm:$0xff]  ;;  %v333_v38 = vld [vmem:[%s1118_s9 + $0x10] sm:$0xff]  ;;  %v332_v39 = vld [vmem:[%s1118_s9 + $0x8] sm:$0xff]  ;;  %s997_s23 = smov [#allocation3]  }
  0xca   : > { %v331_v40 = vld [vmem:[%s1118_s9] sm:$0xff]  ;;  %v538_v42 = vld [vmem:[%s1108_s30 + $0x8] sm:$0xff]  ;;  %v539_v43 = vld [vmem:[%s1108_s30 + $0x10] sm:$0xff]  ;;  %p904_p2 = pnand %p903_p1, %p1077_p3  ;;  %s906_s24 = sshll.u32 %s997_s23, 4  ;;  %s907_s24 = int_to_ptr.vmem [resolvable:$false] %s906_s24 }
  0xcb   : > { %419 = vperm.xlu0 %900, %v345_v27   ;;  %409 = vperm.xlu1 %901, %v343_v28   ;;  %v537_v41 = vld [vmem:[%s1108_s30] sm:$0xff]  ;;  %v540_v44 = vld [vmem:[%s1108_s30 + $0x18] sm:$0xff]  ;;  %v443_v45 = vld [vmem:[#allocation2 + $0x10] sm:$0xff]  ;;  %s908_s27 = scalar_lea.vmem %s907_s24, 1024  ;;  %p909_p5 = scmp.lt.s32.totalorder %s1168_s10, %s907_s24 }
  0xcc   : > { %v445_v46 = vld [vmem:[#allocation2 + $0x18] sm:$0xff]  ;;  %779 = vmatprep.mubr.f32.mxu0 %v443_v45  ;;  %v328_v50 = vld [vmem:[%s1113_s8 + $0x68] sm:$0xff]  ;;  %v329_v51 = vld [vmem:[%s1113_s8 + $0x70] sm:$0xff]  ;;  %p905_p4 = pneg %p904_p2  ;;  %p910_p6 = scmp.lt.s32.totalorder %s908_s27, %s902_s14 }
  0xcd   : > { %782 = vmatprep.mubr.f32.mxu1 %v445_v46  ;;  %v330_v47 = vld [vmem:[%s1113_s8 + $0x78] sm:$0xff]  ;;  %v327_v56 = vld [vmem:[%s1113_s8 + $0x60] sm:$0xff]  ;;  %v325_v63 = vld [vmem:[%s1113_s8 + $0x50] sm:$0xff] }
  0xce   : > { %v326_v60 = vld [vmem:[%s1113_s8 + $0x58] sm:$0xff]  ;;  %v324_v2 = vld [vmem:[%s1113_s8 + $0x48] sm:$0xff]  ;;  %v323_v5 = vld [vmem:[%s1113_s8 + $0x40] sm:$0xff]  ;;  %p911_p7 = por %p910_p6, %p909_p5 }
  0xcf   : > { %404 = vperm.xlu0 %900, %v342_v29   ;;  %399 = vperm.xlu1 %901, %v341_v30   ;;  %v322_v8 = vld [vmem:[%s1113_s8 + $0x38] sm:$0xff]  ;;  %v321_v11 = vld [vmem:[%s1113_s8 + $0x30] sm:$0xff]  ;;  %v320_v14 = vld [vmem:[%s1113_s8 + $0x28] sm:$0xff] }
  0xd0   : > { %v319_v17 = vld [vmem:[%s1113_s8 + $0x20] sm:$0xff]  ;;  %v318_v20 = vld [vmem:[%s1113_s8 + $0x18] sm:$0xff]  ;;  %v317_v23 = vld [vmem:[%s1113_s8 + $0x10] sm:$0xff]  ;;  %p912_p9 = pnand %p911_p7, %p905_p4 }
  0xd1   : > { %v316_v26 = vld [vmem:[%s1113_s8 + $0x8] sm:$0xff]  ;;  %v315_v29 = vld [vmem:[%s1113_s8] sm:$0xff]  ;;  %s723_s8 = sshll.u32 %s586_s26, 7 }
  0xd2   : > { %s1166_s11 = scalar_lea.hbm %s1231_s4, %s723_s8 }
  0xd3   : > { %394 = vperm.xlu0 %900, %v340_v31   ;;  %389 = vperm.xlu1 %901, %v339_v32   ;;  %v444_v31 = vld [vmem:[#allocation2] sm:$0xff]  ;;  %v446_v32 = vld [vmem:[#allocation2 + $0x8] sm:$0xff] }
  0xd7   : > { %384 = vperm.xlu0 %900, %v338_v33   ;;  %379 = vperm.xlu1 %901, %v337_v34   ;;  %v532_v33 = vlaneseq }
  0xdb   : > { %374 = vperm.xlu0 %900, %v336_v35   ;;  %369 = vperm.xlu1 %901, %v335_v36   ;;  %v533_v35 = vand.u32 127, %v532_v33  ;;  %v535_v36 = vstv %s715_s21 }
  0xdf   : > { %364 = vperm.xlu0 %900, %v334_v37   ;;  %359 = vperm.xlu1 %901, %v333_v38   ;;  %v536_v38 = vadd.s32 %v535_v36, %v533_v35 }
  0xe3   : > { %354 = vperm.xlu0 %900, %v332_v39   ;;  %349 = vperm.xlu1 %901, %v331_v40  }
  0xe7   : > { %542 = vperm.xlu0 %900, %v537_v41   ;;  %545 = vperm.xlu1 %901, %v538_v42  }
  0xeb   : > { %548 = vperm.xlu0 %900, %v539_v43   ;;  %551 = vperm.xlu1 %901, %v540_v44  }
 0x142   : > { %v425_v48 = vpop.permute.xlu0 %424  ;;  %v415_v52 = vpop.permute.xlu1 %414 }
 0x143   : > { %v442_v49 = vmul.f32 %v425_v48, %v330_v47  ;;  %v440_v54 = vmul.f32 %v415_v52, %v328_v50 }
 0x145   : > { %747 = vmatprep.subr.mxu0 %v442_v49  ;;  %785 = vmatprep.subr.mxu1 %v442_v49 }
 0x146   : > { %v420_v53 = vpop.permute.xlu0 %419  ;;  %748 = vmatpush3.xpose.msra.mxu0 %v442_v49  ;;  %801 = vmatpush3.xpose.msra.mxu1 %v442_v49  ;;  %v410_v57 = vpop.permute.xlu1 %409 }
 0x147   : > { %v441_v55 = vmul.f32 %v420_v53, %v329_v51  ;;  %v439_v58 = vmul.f32 %v410_v57, %v327_v56 }
 0x149   : > { %749 = vmatprep.subr.mxu0 %v441_v55  ;;  %786 = vmatprep.subr.mxu1 %v441_v55 }
 0x14a   : > { %750 = vmatpush3.xpose.msra.mxu0 %v441_v55  ;;  %802 = vmatpush3.xpose.msra.mxu1 %v441_v55  ;;  %v405_v59 = vpop.permute.xlu0 %404  ;;  %v400_v62 = vpop.permute.xlu1 %399 }
 0x14b   : > { %751 = vmatprep.subr.mxu0 %v440_v54  ;;  %787 = vmatprep.subr.mxu1 %v440_v54  ;;  %v438_v61 = vmul.f32 %v405_v59, %v326_v60  ;;  %v437_v0 = vmul.f32 %v400_v62, %v325_v63 }
 0x14e   : > { %752 = vmatpush3.xpose.msra.mxu0 %v440_v54  ;;  %803 = vmatpush3.xpose.msra.mxu1 %v440_v54  ;;  %v395_v1 = vpop.permute.xlu0 %394  ;;  %v390_v4 = vpop.permute.xlu1 %389 }
 0x14f   : > { %753 = vmatprep.subr.mxu0 %v439_v58  ;;  %788 = vmatprep.subr.mxu1 %v439_v58  ;;  %v436_v3 = vmul.f32 %v395_v1, %v324_v2  ;;  %v435_v6 = vmul.f32 %v390_v4, %v323_v5 }
 0x152   : > { %754 = vmatpush3.xpose.msra.mxu0 %v439_v58  ;;  %804 = vmatpush3.xpose.msra.mxu1 %v439_v58  ;;  %v385_v7 = vpop.permute.xlu0 %384  ;;  %v380_v10 = vpop.permute.xlu1 %379 }
 0x153   : > { %755 = vmatprep.subr.mxu0 %v438_v61  ;;  %789 = vmatprep.subr.mxu1 %v438_v61  ;;  %v434_v9 = vmul.f32 %v385_v7, %v322_v8  ;;  %v433_v12 = vmul.f32 %v380_v10, %v321_v11 }
 0x156   : > { %756 = vmatpush3.xpose.msra.mxu0 %v438_v61  ;;  %805 = vmatpush3.xpose.msra.mxu1 %v438_v61  ;;  %v375_v13 = vpop.permute.xlu0 %374  ;;  %v370_v16 = vpop.permute.xlu1 %369 }
 0x157   : > { %757 = vmatprep.subr.mxu0 %v437_v0  ;;  %790 = vmatprep.subr.mxu1 %v437_v0  ;;  %v432_v15 = vmul.f32 %v375_v13, %v320_v14  ;;  %v431_v18 = vmul.f32 %v370_v16, %v319_v17 }
 0x15a   : > { %758 = vmatpush3.xpose.msra.mxu0 %v437_v0  ;;  %806 = vmatpush3.xpose.msra.mxu1 %v437_v0  ;;  %v365_v19 = vpop.permute.xlu0 %364  ;;  %v360_v22 = vpop.permute.xlu1 %359 }
 0x15b   : > { %759 = vmatprep.subr.mxu0 %v436_v3  ;;  %791 = vmatprep.subr.mxu1 %v436_v3  ;;  %v430_v21 = vmul.f32 %v365_v19, %v318_v20  ;;  %v429_v24 = vmul.f32 %v360_v22, %v317_v23 }
 0x15e   : > { %760 = vmatpush3.xpose.msra.mxu0 %v436_v3  ;;  %807 = vmatpush3.xpose.msra.mxu1 %v436_v3  ;;  %v355_v25 = vpop.permute.xlu0 %354  ;;  %v350_v28 = vpop.permute.xlu1 %349 }
 0x15f   : > { %761 = vmatprep.subr.mxu0 %v435_v6  ;;  %792 = vmatprep.subr.mxu1 %v435_v6  ;;  %v428_v27 = vmul.f32 %v355_v25, %v316_v26  ;;  %v427_v30 = vmul.f32 %v350_v28, %v315_v29 }
 0x162   : > { %762 = vmatpush3.xpose.msra.mxu0 %v435_v6  ;;  %808 = vmatpush3.xpose.msra.mxu1 %v435_v6  ;;  %v546_v34 = vpop.permute.xlu1 %545  ;;  %v543_v37 = vpop.permute.xlu0 %542 }
 0x163   : > { %763 = vmatprep.subr.mxu0 %v434_v9  ;;  %793 = vmatprep.subr.mxu1 %v434_v9  ;;  %vm554_vm0 = vcmp.eq.s32.totalorder %v536_v38, %v546_v34  ;;  %vm553_vm2 = vcmp.eq.s32.totalorder %v536_v38, %v543_v37 }
 0x166   : > { %764 = vmatpush3.xpose.msra.mxu0 %v434_v9  ;;  %809 = vmatpush3.xpose.msra.mxu1 %v434_v9  ;;  %v552_v39 = vpop.permute.xlu1 %551  ;;  %v549_v42 = vpop.permute.xlu0 %548 }
 0x167   : > { %765 = vmatprep.subr.mxu0 %v433_v12  ;;  %794 = vmatprep.subr.mxu1 %v433_v12  ;;  %vm556_vm1 = vcmp.eq.s32.totalorder %v536_v38, %v552_v39  ;;  %vm555_vm3 = vcmp.eq.s32.totalorder %v536_v38, %v549_v42 }
 0x16a   : > { %766 = vmatpush3.xpose.msra.mxu0 %v433_v12  ;;  %810 = vmatpush3.xpose.msra.mxu1 %v433_v12 }
 0x16b   : > { %767 = vmatprep.subr.mxu0 %v432_v15  ;;  %795 = vmatprep.subr.mxu1 %v432_v15 }
 0x16e   : > { %768 = vmatpush3.xpose.msra.mxu0 %v432_v15  ;;  %811 = vmatpush3.xpose.msra.mxu1 %v432_v15 }
 0x16f   : > { %769 = vmatprep.subr.mxu0 %v431_v18  ;;  %796 = vmatprep.subr.mxu1 %v431_v18 }
 0x172   : > { %770 = vmatpush3.xpose.msra.mxu0 %v431_v18  ;;  %812 = vmatpush3.xpose.msra.mxu1 %v431_v18 }
 0x173   : > { %771 = vmatprep.subr.mxu0 %v430_v21  ;;  %797 = vmatprep.subr.mxu1 %v430_v21 }
 0x176   : > { %772 = vmatpush3.xpose.msra.mxu0 %v430_v21  ;;  %813 = vmatpush3.xpose.msra.mxu1 %v430_v21 }
 0x177   : > { %773 = vmatprep.subr.mxu0 %v429_v24  ;;  %798 = vmatprep.subr.mxu1 %v429_v24 }
 0x17a   : > { %774 = vmatpush3.xpose.msra.mxu0 %v429_v24  ;;  %814 = vmatpush3.xpose.msra.mxu1 %v429_v24 }
 0x17b   : > { %775 = vmatprep.subr.mxu0 %v428_v27  ;;  %799 = vmatprep.subr.mxu1 %v428_v27 }
 0x17e   : > { %776 = vmatpush3.xpose.msra.mxu0 %v428_v27  ;;  %815 = vmatpush3.xpose.msra.mxu1 %v428_v27 }
 0x17f   : > { %777 = vmatprep.subr.mxu0 %v427_v30  ;;  %800 = vmatprep.subr.mxu1 %v427_v30 }
 0x182   : > { %778 = vmatpush3.xpose.msra.mxu0 %v427_v30  ;;  %816 = vmatpush3.xpose.msra.mxu1 %v427_v30 }
 0x185   : > { %780 = vmatmul.mubr.f32.vlgmr.msra.gmra.mxu0 %v444_v31  ;;  %783 = vmatmul.mubr.f32.vlgmr.msra.gmra.mxu1 %v446_v32 }
 0x245   : > { %v781_v40 = vpop.f32.mrf.mxu0  ;;  %v784_v41 = vpop.f32.mrf.mxu1 }
 0x246   : > { %v717_v43 = vadd.f32 -0.3, %v781_v40  ;;  %v719_v44 = vadd.f32 -0.3, %v784_v41 }
 0x247   : > { %v513_v45 = vpop.f32.mrf.mxu0  ;;  %v523_v46 = vpop.f32.mrf.mxu1 }
 0x248   : > { %v562_v47 = vsel %vm554_vm0, %v717_v43, %v781_v40  ;;  %v564_v48 = vsel %vm556_vm1, %v719_v44, %v784_v41  ;;  %v716_v49 = vadd.f32 -0.3, %v513_v45  ;;  %v718_v50 = vadd.f32 -0.3, %v523_v46 }
 0x249   : > { %v566_v51 = vmul.f32 30.0, %v562_v47  ;;  %v568_v52 = vmul.f32 30.0, %v564_v48 }
 0x24a   : > { %v561_v53 = vsel %vm553_vm2, %v716_v49, %v513_v45  ;;  %v563_v54 = vsel %vm555_vm3, %v718_v50, %v523_v46 }
 0x24b   : > { %570 = vst [vmem:[%s1120_s20 + $0x8] sm:$0xff] %v566_v51  ;;  %572 = vst [vmem:[%s1120_s20 + $0x18] sm:$0xff] %v568_v52  ;;  %v565_v55 = vmul.f32 30.0, %v561_v53  ;;  %v567_v56 = vmul.f32 30.0, %v563_v54 }
 0x24d   : > { %569 = vst [vmem:[%s1120_s20] sm:$0xff] %v565_v55  ;;  %571 = vst [vmem:[%s1120_s20 + $0x10] sm:$0xff] %v567_v56 }
 0x24e   : > { %915 = shalt.err (!%p912_p9)
}
 0x24f   : > { %s916_s20 = scalar_lea.hbm %s1166_s11, 512  ;;  %s920_s6 = scalar_lea.hbm %s1231_s4, 2048 }
 0x250   : > { %p917_p10 = scmp.ne.s32.totalorder %s1166_s11, %s916_s20  ;;  %p921_p13 = scmp.lt.s32.totalorder %s1166_s11, %s1231_s4 }
 0x251   : > { %p922_p0 = scmp.lt.s32.totalorder %s920_s6, %s916_s20 }
 0x252   : > { %p918_p11 = pnand %p917_p10, %p1077_p3 }
 0x253   : > { %p923_p1 = por %p922_p0, %p921_p13 }
 0x254   : > { %p919_p12 = pneg %p918_p11 }
 0x256   : > { %p924_p2 = pnand %p923_p1, %p919_p12 }
 0x258   : > { %927 = shalt.err (!%p924_p2)
}
 0x259   : > { %s998_s25 = smov 128   ;;  %s999_s26 = smov 256  }
 0x25a   : > { %s1000_s8 = smov 8  }
 0x25b   : > { %817 = dma.vmem_to_hbm [thread:$0]  (%p1077_p3), %s1168_s10, 512, %s1166_s11, %s1176_s13, %s998_s25, %s999_s26, %s1000_s8  }
 0x25c PF: > { %p823_p4 = scmp.ge.s32.totalorder %s994_s22, 2  ;;  %s604_s18 = sand.u32 1, %s966_s15  }
 0x25d   : > { %s605_s19 = scalar_lea.sflag [#allocation4], %s604_s18 }
 0x25e   : > { %p820_p5 = pnand %p823_p4, %p1086_p8 }
 0x260   : > { %p821_p6 = pneg %p820_p5 }
 0x262   : > { %961 = dma.done.wait (%p821_p6), %s605_s19, 512  }
 0x263   : > { %963 = vsyncadd (%p821_p6), %s605_s19, 4294966784  ;;  %s17_s22 = sadd.s32 1, %s994_s22   ;;  %s1244_s18 = sld [smem:[#allocation6_spill]] }
 0x264   : > { %p14_p7 = scmp.ge.s32.totalorder %s17_s22, 6   ;;  %s1245_s19 = sld [smem:[#allocation7_spill]] }
 0x265   : > { %s1246_s20 = sld [smem:[#allocation8_spill]]  ;;  %s1248_s15 = smov %s970_s16 }
 0x266   : > { %s1247_s21 = sld [smem:[#allocation9_spill]]  ;;  %s1249_s16 = smov %s974_s17 }
 0x267   : > { %s1250_s17 = smov %s1095_s7  ;;  %16 = sbr.rel (!%p14_p7) target bundleno = 5 (0x5), region = 84 }
 0x26c   :  { %610 = vsyncpa [#allocation4], 1 }
 0x26d   :  { %612 = vsyncpa [#allocation4 + $0x1], 1 }

</bundles_post_ra>
